<compile_context>
chip_gen: v7x
topology: tpu7x:2x2x1
jax: 0.10.0
libtpu: 0.0.40
codegen_flags: <defaults>
</compile_context>

<pallas_src>
import jax
import jax.numpy as jnp
from jax import lax
from jax.experimental import pallas as pl
from jax.experimental.pallas import tpu as pltpu

H1, H2 = 120, 84            # hidden sizes fixed by the PyTorch module
_MAX_BATCH_TILE = 8192      # rows per grid step for huge replay batches
_SMALL_BATCH = 16           # below this, a single grid step is cheapest


def _round_up(n, m):
    return ((n + m - 1) // m) * m


def _cdiv(a, b):
    return (a + b - 1) // b


# --------------------------- fused forward kernel ---------------------------
def qnet_kernel(x_ref, w1_ref, w2_ref, w3_ref, b_ref, o_ref):
    """q = relu(x@W1t) @ W2t + b2 -> relu -> @ W3t + b3 (f32 accumulate).

    Layer-1 bias is folded into W1t (x carries a ones column), so the first
    epilogue is a bare ReLU.
    """
    f32 = jnp.float32
    h1 = jnp.dot(x_ref[...], w1_ref[...], preferred_element_type=f32)
    h1 = jnp.maximum(h1, 0.0)                                   # f32 VPU
    h2 = jnp.dot(h1.astype(w2_ref.dtype), w2_ref[...],
                 preferred_element_type=f32)
    h2 = jnp.maximum(h2 + b_ref[0:1, 0:w2_ref.shape[1]], 0.0)   # f32 VPU
    y = jnp.dot(h2.astype(w3_ref.dtype), w3_ref[...],
                preferred_element_type=f32)
    o_ref[...] = y + b_ref[1:2, 0:w3_ref.shape[1]]


# ----------------- once-per-update parameter preparation --------------------
def prepare_params(params, dtype=jnp.bfloat16):
    """Hoist AOL normalization, padding, transpose and bias-folding out of the
    per-step forward.  Call once per parameter update; reuse across forwards.

    d / W are computed in f32; only the final MXU operands are cast to
    `dtype` (bf16 by default, f32 for exact fidelity).
    """
    (p1, b1), (p2, b2), (p3, b3) = params
    obs_dim = p1.shape[1]
    h1, h2 = p1.shape[0], p2.shape[0]
    n_act = p3.shape[0]

    obs_p = _round_up(obs_dim + 1, 8)   # +1 column carries the folded b1
    act_p = _round_up(n_act, 8)         # tiny dims: sublane/lane pad to 8 only
    h1_p = _round_up(h1, 128)           # hidden dims live on the lane axis
    h2_p = _round_up(h2, 128)

    def aol_wt(P):
        # W = P @ diag(rsqrt(colsum(|P^T P|) + 1e-10)); return W^T -> (in, out)
        ptp = jnp.abs(
            lax.dot_general(P, P, (((0,), (0,)), ((), ())),
                            preferred_element_type=jnp.float32))
        d = lax.rsqrt(jnp.sum(ptp, axis=0) + 1e-10)
        return (P * d[None, :]).T

    def pad2(a, r, c):
        return jnp.zeros((r, c), jnp.float32).at[:a.shape[0], :a.shape[1]].set(a)

    w1t = pad2(aol_wt(p1), obs_p, h1_p)
    w1t = w1t.at[obs_dim, :h1].set(b1)          # folded layer-1 bias row
    w1t = w1t.astype(dtype)
    w2t = pad2(aol_wt(p2), h1_p, h2_p).astype(dtype)
    w3t = pad2(aol_wt(p3), h2_p, act_p).astype(dtype)

    bw = max(h2_p, act_p)
    biases = jnp.zeros((8, bw), jnp.float32)    # packed: one operand, one DMA
    biases = biases.at[0, :h2].set(b2).at[1, :n_act].set(b3)
    return (w1t, w2t, w3t, biases, obs_dim, n_act)


# ------------------------------ forward wrapper ------------------------------
def qnetwork_apply(x, prepped):
    """x: (B, obs_dim) f32.  prepped: output of prepare_params()."""
    w1t, w2t, w3t, biases, obs_dim, n_act = prepped
    B = x.shape[0]
    obs_p = w1t.shape[0]
    act_p = w3t.shape[1]

    # Feature-only padding: [x | 1 | 0...].  The ones column multiplies the
    # folded-bias row of w1t.  No batch-row padding (last block overhangs).
    xp = jnp.concatenate(
        [x.astype(w1t.dtype),
         jnp.ones((B, 1), w1t.dtype),
         jnp.zeros((B, obs_p - obs_dim - 1), w1t.dtype)],
        axis=1)

    # Batch tiling: tiny batches -> 1 step; otherwise split into >=2 steps so
    # the "parallel" axis shards across both v7x TensorCores, capped at
    # _MAX_BATCH_TILE rows/step for huge replay batches.
    if B <= _SMALL_BATCH:
        tile_b = _round_up(B, 8)
    else:
        tile_b = min(_MAX_BATCH_TILE, _round_up(_cdiv(B, 2), 8))
    grid_b = _cdiv(B, tile_b)

    out = pl.pallas_call(
        qnet_kernel,
        out_shape=jax.ShapeDtypeStruct((B, act_p), jnp.float32),
        grid=(grid_b,),
        in_specs=[
            pl.BlockSpec((tile_b, obs_p), lambda i: (i, 0)),
            # Constant (0,0) index_maps: Pallas skips re-DMA of these across
            # grid steps, so weights/biases are fetched once.
            pl.BlockSpec(w1t.shape, lambda i: (0, 0)),
            pl.BlockSpec(w2t.shape, lambda i: (0, 0)),
            pl.BlockSpec(w3t.shape, lambda i: (0, 0)),
            pl.BlockSpec(biases.shape, lambda i: (0, 0)),
        ],
        out_specs=pl.BlockSpec((tile_b, act_p), lambda i: (i, 0)),
        compiler_params=pltpu.CompilerParams(
            dimension_semantics=("parallel",),
            # 8192-row f32 h1/h2 intermediates (~8 MiB) + double-buffered
            # x/out; raise above v5e's 16 MiB scoped default, well under
            # every generation's physical VMEM.
            vmem_limit_bytes=48 * 1024 * 1024),
    )(xp, w1t, w2t, w3t, biases)

    return out[:, :n_act]


# ------------------------- pure-JAX reference -------------------------------
def _aol_ref(x, P, b):
    ptp = jnp.abs(P.T @ P)
    d = 1.0 / jnp.sqrt(ptp.sum(axis=0) + 1e-10)
    W = P * d[None, :]
    return x @ W.T + b


def qnetwork_ref(x, params):
    (p1, b1), (p2, b2), (p3, b3) = params
    h = jnp.maximum(_aol_ref(x, p1, b1), 0.0)
    h = jnp.maximum(_aol_ref(h, p2, b2), 0.0)
    return _aol_ref(h, p3, b3)


if __name__ == "__main__":
    # Small env-like shapes: obs_dim=4 (CartPole), n_actions=2, batch=2.
    obs_dim, n_actions, batch = 4, 2, 2

    key = jax.random.PRNGKey(0)
    k1, k2, k3, kx, kb = jax.random.split(key, 5)

    # P ~ randn(out, in), bias = zeros(out) -- matches the module's init.
    params = (
        (jax.random.normal(k1, (H1, obs_dim), jnp.float32),
         jnp.zeros((H1,), jnp.float32)),
        (jax.random.normal(k2, (H2, H1), jnp.float32),
         jnp.zeros((H2,), jnp.float32)),
        (jax.random.normal(k3, (n_actions, H2), jnp.float32),
         jnp.zeros((n_actions,), jnp.float32)),
    )
    x = jax.random.normal(kx, (batch, obs_dim), jnp.float32)
    ref = jax.block_until_ready(qnetwork_ref(x, params))

    # f32 operand path (tolerance reflects default MXU precision differences
    # between the Pallas lowering and the XLA reference dot).
    prepped_f32 = prepare_params(params, jnp.float32)
    fwd_f32 = jax.jit(lambda xx: qnetwork_apply(xx, prepped_f32))
    out_f32 = jax.block_until_ready(fwd_f32(x))
    assert out_f32.shape == (batch, n_actions)
    assert jnp.allclose(out_f32, ref, rtol=5e-3, atol=5e-3), (out_f32, ref)

    # Default bf16 MXU path (f32 accumulation, f32 bias/ReLU).
    prepped_bf16 = prepare_params(params)
    fwd_bf16 = jax.jit(lambda xx: qnetwork_apply(xx, prepped_bf16))
    out_bf16 = jax.block_until_ready(fwd_bf16(x))
    assert out_bf16.shape == (batch, n_actions)
    assert jnp.allclose(out_bf16, ref, rtol=5e-2, atol=2e-2), (out_bf16, ref)

    # Replay-style batch: exercises the multi-step grid and the overhanging
    # (non-divisible) last batch block.
    big_b = 300
    xb = jax.random.normal(kb, (big_b, obs_dim), jnp.float32)
    refb = jax.block_until_ready(qnetwork_ref(xb, params))
    outb = jax.block_until_ready(jax.jit(
        lambda xx: qnetwork_apply(xx, prepped_f32))(xb))
    assert outb.shape == (big_b, n_actions)
    assert jnp.allclose(outb, refb, rtol=5e-3, atol=5e-3)

    print("KERNEL_OK")
</pallas_src>

<mosaic_0001>
module attributes {stable_mosaic.version = 11 : i64} {
  func.func @qnet_kernel(%arg0: i32, %arg1: memref<8x8xf32, #tpu.memory_space<vmem>>, %arg2: memref<8x128xf32, #tpu.memory_space<vmem>>, %arg3: memref<128x128xf32, #tpu.memory_space<vmem>>, %arg4: memref<128x8xf32, #tpu.memory_space<vmem>>, %arg5: memref<8x128xf32, #tpu.memory_space<vmem>>, %arg6: memref<8x8xf32, #tpu.memory_space<vmem>>) attributes {dimension_semantics = [#tpu.dimension_semantics<parallel>], iteration_bounds = array<i64: 1>, scalar_prefetch = 0 : i64, scratch_operands = 0 : i64, tpu.core_type = #tpu.core_type<tc>, window_params = [{transform_indices = @transform_0, window_bounds = array<i64: 8, 8>}, {pipeline_mode = #tpu.pipeline_mode<synchronous>, transform_indices = @transform_1, window_bounds = array<i64: 8, 128>}, {pipeline_mode = #tpu.pipeline_mode<synchronous>, transform_indices = @transform_2, window_bounds = array<i64: 128, 128>}, {pipeline_mode = #tpu.pipeline_mode<synchronous>, transform_indices = @transform_3, window_bounds = array<i64: 128, 8>}, {pipeline_mode = #tpu.pipeline_mode<synchronous>, transform_indices = @transform_4, window_bounds = array<i64: 8, 128>}, {transform_indices = @transform_5, window_bounds = array<i64: 8, 8>}]} {
    %c0 = arith.constant 0 : index
    %c0_0 = arith.constant 0 : index
    %0 = vector.load %arg1[%c0, %c0_0] : memref<8x8xf32, #tpu.memory_space<vmem>>, vector<8x8xf32>
    %c0_1 = arith.constant 0 : index
    %c0_2 = arith.constant 0 : index
    %1 = vector.load %arg2[%c0_1, %c0_2] : memref<8x128xf32, #tpu.memory_space<vmem>>, vector<8x128xf32>
    %cst = arith.constant dense<0.000000e+00> : vector<8x128xf32>
    %2 = tpu.matmul %0, %1, %cst {dimension_numbers = #tpu.dot_dimension_numbers<[1], [0], [0], [1], [0, 0, 1, 1], [], []>} : vector<8x8xf32>, vector<8x128xf32>, vector<8x128xf32> -> vector<8x128xf32>
    %cst_3 = arith.constant 0.000000e+00 : f32
    %3 = vector.broadcast %cst_3 : f32 to vector<8x128xf32>
    %4 = arith.maximumf %2, %3 : vector<8x128xf32>
    %c0_4 = arith.constant 0 : index
    %c0_5 = arith.constant 0 : index
    %5 = vector.load %arg3[%c0_4, %c0_5] : memref<128x128xf32, #tpu.memory_space<vmem>>, vector<128x128xf32>
    %cst_6 = arith.constant dense<0.000000e+00> : vector<8x128xf32>
    %6 = tpu.matmul %4, %5, %cst_6 {dimension_numbers = #tpu.dot_dimension_numbers<[1], [0], [0], [1], [0, 0, 1, 1], [], []>} : vector<8x128xf32>, vector<128x128xf32>, vector<8x128xf32> -> vector<8x128xf32>
    %c0_7 = arith.constant 0 : index
    %c0_8 = arith.constant 0 : index
    %7 = vector.load %arg5[%c0_7, %c0_8] : memref<8x128xf32, #tpu.memory_space<vmem>>, vector<1x128xf32>
    %8 = vector.broadcast %7 : vector<1x128xf32> to vector<8x128xf32>
    %9 = arith.addf %6, %8 : vector<8x128xf32>
    %cst_9 = arith.constant 0.000000e+00 : f32
    %10 = vector.broadcast %cst_9 : f32 to vector<8x128xf32>
    %11 = arith.maximumf %9, %10 : vector<8x128xf32>
    %c0_10 = arith.constant 0 : index
    %c0_11 = arith.constant 0 : index
    %12 = vector.load %arg4[%c0_10, %c0_11] : memref<128x8xf32, #tpu.memory_space<vmem>>, vector<128x8xf32>
    %cst_12 = arith.constant dense<0.000000e+00> : vector<8x8xf32>
    %13 = tpu.matmul %11, %12, %cst_12 {dimension_numbers = #tpu.dot_dimension_numbers<[1], [0], [0], [1], [0, 0, 1, 1], [], []>} : vector<8x128xf32>, vector<128x8xf32>, vector<8x8xf32> -> vector<8x8xf32>
    %c1 = arith.constant 1 : index
    %c0_13 = arith.constant 0 : index
    %14 = vector.load %arg5[%c1, %c0_13] : memref<8x128xf32, #tpu.memory_space<vmem>>, vector<1x8xf32>
    %15 = vector.broadcast %14 : vector<1x8xf32> to vector<8x8xf32>
    %16 = arith.addf %13, %15 : vector<8x8xf32>
    %c0_14 = arith.constant 0 : index
    %c0_15 = arith.constant 0 : index
    %17 = vector.load %arg6[%c0_14, %c0_15] : memref<8x8xf32, #tpu.memory_space<vmem>>, vector<8x8xf32>
    tpu.vector_store %arg6[%c0_14, %c0_15], %16 {strides = array<i32>} : memref<8x8xf32, #tpu.memory_space<vmem>>, vector<8x8xf32>,
    return
  }
  func.func @transform_0(%arg0: i32) -> (i32, i32) {
    %c0_i32 = arith.constant 0 : i32
    %c0_i32_0 = arith.constant 0 : i32
    return %arg0, %c0_i32 : i32, i32
  }
  func.func @transform_1(%arg0: i32) -> (i32, i32) {
    %c0_i32 = arith.constant 0 : i32
    %c0_i32_0 = arith.constant 0 : i32
    %c0_i32_1 = arith.constant 0 : i32
    return %c0_i32, %c0_i32_0 : i32, i32
  }
  func.func @transform_2(%arg0: i32) -> (i32, i32) {
    %c0_i32 = arith.constant 0 : i32
    %c0_i32_0 = arith.constant 0 : i32
    %c0_i32_1 = arith.constant 0 : i32
    return %c0_i32, %c0_i32_0 : i32, i32
  }
  func.func @transform_3(%arg0: i32) -> (i32, i32) {
    %c0_i32 = arith.constant 0 : i32
    %c0_i32_0 = arith.constant 0 : i32
    %c0_i32_1 = arith.constant 0 : i32
    return %c0_i32, %c0_i32_0 : i32, i32
  }
  func.func @transform_4(%arg0: i32) -> (i32, i32) {
    %c0_i32 = arith.constant 0 : i32
    %c0_i32_0 = arith.constant 0 : i32
    %c0_i32_1 = arith.constant 0 : i32
    return %c0_i32, %c0_i32_0 : i32, i32
  }
  func.func @transform_5(%arg0: i32) -> (i32, i32) {
    %c0_i32 = arith.constant 0 : i32
    %c0_i32_0 = arith.constant 0 : i32
    return %arg0, %c0_i32 : i32, i32
  }
}

</mosaic_0001>

<bundles_post_ra>
// kernel: _lambda_.1
= control target key start
LH: loop header
LB: loop body
LE: loop exit
PB: predicated region body
PF: predicated region fallthrough
CT: control target
= control target key end

     0   :  { %10 = vsyncpa [#allocation3], 0  ;;  %s681_s0 = inlined_call_operand.vmem [shape: f32[2,8], index: 0, kind: input, shape index: {}]   ;;  %s682_s1 = inlined_call_operand.vmem [shape: f32[8,128], index: 1, kind: input, shape index: {}]   ;;  %s683_s2 = inlined_call_operand.hbm [shape: f32[128,128], index: 2, kind: input, shape index: {}]   ;;  %s684_s3 = inlined_call_operand.hbm [shape: f32[128,8], index: 3, kind: input, shape index: {}]   ;;  %s685_s4 = inlined_call_operand.vmem [shape: f32[8,128], index: 4, kind: input, shape index: {}]   ;;  %s686_s5 = inlined_call_operand.hbm [shape: f32[2,8], index: 5, kind: output, shape index: {}]  }
   0x1   :  { %11 = vsyncpa [#allocation6], 0 }
   0x2   :  { %12 = vsyncpa [#allocation4], 0  ;;  %s572_s18 = smov [#allocation2]   ;;  %s500_s22 = scalar_lea.hbm %s683_s2, 2048 }
   0x3   :  { %s22_s19 = sshll.u32 %s572_s18, 4  ;;  %p501_p0 = scmp.ne.s32.totalorder %s683_s2, %s500_s22  ;;  %s23_s19 = int_to_ptr.vmem [resolvable:$true] %s22_s19 }
   0x4   :  { %p504_p1 = scmp.lt.u32.totalorder %s500_s22, %s683_s2 }
   0x6   :  { %p506_p2 = pnand %p504_p1, %p501_p0 }
   0x8   :  { %509 = shalt.err (!%p506_p2)
}
   0x9   :  { %s510_s27 = scalar_lea.vmem %s23_s19, 2048  ;;  %p515_p4 = scmp.lt.s32.totalorder %s23_s19, %s23_s19 }
   0xa   :  { %p511_p3 = scmp.ne.s32.totalorder %s23_s19, %s510_s27  ;;  %p516_p5 = scmp.lt.s32.totalorder %s510_s27, %s510_s27 }
   0xc   :  { %p517_p6 = por %p516_p5, %p515_p4 }
   0xe   :  { %p518_p7 = pnand %p517_p6, %p511_p3 }
  0x10   :  { %521 = shalt.err (!%p518_p7)
}
  0x11   :  { %s573_s28 = smov 128   ;;  %s574_s29 = smov 8  }
  0x12   :  { %28 = dma.hbm_to_vmem [thread:$0]  %s683_s2, 2048, %s23_s19, [#allocation3], %s573_s28, %s573_s28, %s574_s29  }
  0x13   :  { %s575_s7 = smov [#allocation5]   ;;  %s522_s11 = scalar_lea.hbm %s684_s3, 2048 }
  0x14   :  { %s34_s8 = sshll.u32 %s575_s7, 4  ;;  %p523_p8 = scmp.ne.s32.totalorder %s684_s3, %s522_s11  ;;  %s35_s8 = int_to_ptr.vmem [resolvable:$true] %s34_s8 }
  0x15   :  { %p526_p9 = scmp.lt.u32.totalorder %s522_s11, %s684_s3 }
  0x17   :  { %p528_p10 = pnand %p526_p9, %p523_p8 }
  0x19   :  { %531 = shalt.err (!%p528_p10)
}
  0x1a   :  { %s532_s16 = scalar_lea.vmem %s35_s8, 2048  ;;  %p537_p12 = scmp.lt.s32.totalorder %s35_s8, %s35_s8 }
  0x1b   :  { %p533_p11 = scmp.ne.s32.totalorder %s35_s8, %s532_s16  ;;  %p538_p13 = scmp.lt.s32.totalorder %s532_s16, %s532_s16 }
  0x1d   :  { %p539_p0 = por %p538_p13, %p537_p12 }
  0x1f   :  { %p540_p1 = pnand %p539_p0, %p533_p11 }
  0x21   :  { %543 = shalt.err (!%p540_p1)
}
  0x22   :  { %40 = dma.hbm_to_vmem [thread:$0]  %s684_s3, 2048, %s35_s8, [#allocation6], %s573_s28, %s573_s28, %s574_s29  }
  0x23   :  { %566 = dma.done.wait [#allocation3], 2048  }
  0x24   :  { %567 = vsyncadd [#allocation3], 4294965248 }
  0x25   :  { %568 = dma.done.wait [#allocation6], 2048  }
  0x26   :  { %569 = vsyncadd [#allocation6], 4294965248  ;;  %v576_v0 = vmov 0.0   ;;  %vm577_vm0 = vmmov 0   ;;  %v578_v1 = vmov 0.0|0.0   ;;  %vm51_vm1 = vcmask 64512  }
  0x27   :  { %367 = vmatprep.subr.mxu0 %v576_v0  ;;  %369 = vmatprep.mubr.msk.f32.mxu0 %vm577_vm0, %v576_v0  ;;  %v50_v2 = vld [vmem:[%s682_s1] sm:$0xff]  ;;  %v127_v5 = vld [vmem:[#allocation2 + $0x8] sm:$0xff]  ;;  %v128_v6 = vld [vmem:[#allocation2 + $0x10] sm:$0xff] }
  0x28   :  { %442 = vmatprep.subr.bf16.mxu1 %v578_v1  ;;  %404 = vmatprep.mubr.msk.f32.mxu1 %vm577_vm0, %v576_v0  ;;  %v49_v3 = vld [vmem:[%s681_s0] sm:$0xff]  ;;  %v129_v7 = vld [vmem:[#allocation2 + $0x18] sm:$0xff]  ;;  %v131_v11 = vld [vmem:[#allocation2 + $0x28] sm:$0xff] }
  0x29   :  { %v126_v4 = vld [vmem:[#allocation2] sm:$0xff]  ;;  %368 = vmatpush3.msra.mxu0 %v50_v2  ;;  %v446_v9 = vpack.c.bf16 %v129_v7, %v128_v6  ;;  %v132_v13 = vld [vmem:[#allocation2 + $0x30] sm:$0xff]  ;;  %v133_v14 = vld [vmem:[#allocation2 + $0x38] sm:$0xff] }
  0x2a   :  { %370 = vmatmul.mubr.msk.f32.vlgmr.msra.gmra.mrb[0].mxu0 %vm51_vm1, %v49_v3  ;;  %v443_v8 = vpack.c.bf16 %v127_v5, %v126_v4  ;;  %466 = vmatprep.subr.bf16.mxu0 %v578_v1  ;;  %v130_v10 = vld [vmem:[#allocation2 + $0x20] sm:$0xff]  ;;  %v452_v15 = vpack.c.bf16 %v133_v14, %v132_v13  ;;  %v135_v17 = vld [vmem:[#allocation2 + $0x48] sm:$0xff]  ;;  %v136_v19 = vld [vmem:[#allocation2 + $0x50] sm:$0xff] }
  0x2b   :  { %439 = vmatprep.mubr.msk.f32.mxu0 %vm577_vm0, %v576_v0  ;;  %v449_v12 = vpack.c.bf16 %v131_v11, %v130_v10  ;;  %v134_v16 = vld [vmem:[#allocation2 + $0x40] sm:$0xff]  ;;  %v137_v20 = vld [vmem:[#allocation2 + $0x58] sm:$0xff]  ;;  %v139_v23 = vld [vmem:[#allocation2 + $0x68] sm:$0xff] }
  0x2c   :  { %444 = vmatpush3.bf16.msra.mxu1 %v443_v8  ;;  %v455_v18 = vpack.c.bf16 %v135_v17, %v134_v16  ;;  %v458_v21 = vpack.c.bf16 %v137_v20, %v136_v19  ;;  %v138_v22 = vld [vmem:[#allocation2 + $0x60] sm:$0xff]  ;;  %v140_v25 = vld [vmem:[#allocation2 + $0x70] sm:$0xff]  ;;  %v141_v26 = vld [vmem:[#allocation2 + $0x78] sm:$0xff] }
  0x2d   :  { %445 = vmatprep.subr.bf16.mxu1 %v578_v1  ;;  %v461_v24 = vpack.c.bf16 %v139_v23, %v138_v22  ;;  %v464_v27 = vpack.c.bf16 %v141_v26, %v140_v25  ;;  %v218_v28 = vld [vmem:[#allocation5] sm:$0xff]  ;;  %v219_v29 = vld [vmem:[#allocation5 + $0x8] sm:$0xff]  ;;  %v220_v30 = vld [vmem:[#allocation5 + $0x10] sm:$0xff] }
  0x2e   :  { %v467_v31 = vpack.c.bf16 %v219_v29, %v218_v28  ;;  %v221_v32 = vld [vmem:[#allocation5 + $0x18] sm:$0xff]  ;;  %v222_v34 = vld [vmem:[#allocation5 + $0x20] sm:$0xff]  ;;  %v223_v35 = vld [vmem:[#allocation5 + $0x28] sm:$0xff] }
  0x2f   :  { %v470_v33 = vpack.c.bf16 %v221_v32, %v220_v30  ;;  %v473_v36 = vpack.c.bf16 %v223_v35, %v222_v34  ;;  %v224_v37 = vld [vmem:[#allocation5 + $0x30] sm:$0xff]  ;;  %v225_v38 = vld [vmem:[#allocation5 + $0x38] sm:$0xff]  ;;  %v226_v40 = vld [vmem:[#allocation5 + $0x40] sm:$0xff] }
  0x30   :  { %447 = vmatpush3.bf16.msra.mxu1 %v446_v9  ;;  %468 = vmatpush3.bf16.msra.mxu0 %v467_v31  ;;  %v476_v39 = vpack.c.bf16 %v225_v38, %v224_v37  ;;  %v227_v41 = vld [vmem:[#allocation5 + $0x48] sm:$0xff]  ;;  %v228_v43 = vld [vmem:[#allocation5 + $0x50] sm:$0xff]  ;;  %v229_v44 = vld [vmem:[#allocation5 + $0x58] sm:$0xff] }
  0x31   :  { %448 = vmatprep.subr.bf16.mxu1 %v578_v1  ;;  %469 = vmatprep.subr.bf16.mxu0 %v578_v1  ;;  %v479_v42 = vpack.c.bf16 %v227_v41, %v226_v40  ;;  %v482_v45 = vpack.c.bf16 %v229_v44, %v228_v43  ;;  %v230_v46 = vld [vmem:[#allocation5 + $0x60] sm:$0xff]  ;;  %v231_v47 = vld [vmem:[#allocation5 + $0x68] sm:$0xff]  ;;  %v232_v52 = vld [vmem:[#allocation5 + $0x70] sm:$0xff] }
  0x32   :  { %v485_v48 = vpack.c.bf16 %v231_v47, %v230_v46  ;;  %v233_v53 = vld [vmem:[#allocation5 + $0x78] sm:$0xff]  ;;  %v329_v55 = vld [vmem:[%s685_s4] ss:$0 sm:$0xff]  ;;  %v330_v60 = vld [vmem:[%s685_s4 + $0x1] ss:$0 sm:$0xff] }
  0x33   :  { %v488_v54 = vpack.c.bf16 %v233_v53, %v232_v52 }
  0x34   :  { %450 = vmatpush3.bf16.msra.mxu1 %v449_v12  ;;  %471 = vmatpush3.bf16.msra.mxu0 %v470_v33 }
  0x35   :  { %451 = vmatprep.subr.bf16.mxu1 %v578_v1  ;;  %472 = vmatprep.subr.bf16.mxu0 %v578_v1 }
  0x38   :  { %453 = vmatpush3.bf16.msra.mxu1 %v452_v15  ;;  %474 = vmatpush3.bf16.msra.mxu0 %v473_v36 }
  0x39   :  { %454 = vmatprep.subr.bf16.mxu1 %v578_v1  ;;  %475 = vmatprep.subr.bf16.mxu0 %v578_v1 }
  0x3c   :  { %456 = vmatpush3.bf16.msra.mxu1 %v455_v18  ;;  %477 = vmatpush3.bf16.msra.mxu0 %v476_v39 }
  0x3d   :  { %457 = vmatprep.subr.bf16.mxu1 %v578_v1  ;;  %478 = vmatprep.subr.bf16.mxu0 %v578_v1 }
  0x40   :  { %459 = vmatpush3.bf16.msra.mxu1 %v458_v21  ;;  %480 = vmatpush3.bf16.msra.mxu0 %v479_v42 }
  0x41   :  { %460 = vmatprep.subr.bf16.mxu1 %v578_v1  ;;  %481 = vmatprep.subr.bf16.mxu0 %v578_v1 }
  0x44   :  { %462 = vmatpush3.bf16.msra.mxu1 %v461_v24  ;;  %483 = vmatpush3.bf16.msra.mxu0 %v482_v45 }
  0x45   :  { %463 = vmatprep.subr.bf16.mxu1 %v578_v1  ;;  %484 = vmatprep.subr.bf16.mxu0 %v578_v1 }
  0x48   :  { %465 = vmatpush3.bf16.msra.mxu1 %v464_v27  ;;  %486 = vmatpush3.bf16.msra.mxu0 %v485_v48 }
  0x49   :  { %487 = vmatprep.subr.bf16.mxu0 %v578_v1 }
  0x4c   :  { %489 = vmatpush3.bf16.msra.mxu0 %v488_v54 }
  0xfd   :  { %v121_v49 = vpop.f32.mrb[0].mxu0 }
  0xfe   :  { %v125_v50 = vmax.f32 %v121_v49, 0.0  ;;  %v371_v51 = vpop.f32.mrb[1].mxu0 }
 0x100   :  { %405 = vmatmul.mubr.f32.vlgmr.msra.gmra.mrb[0].mxu1 %v125_v50 }
 0x1d3   :  { %v213_v56 = vpop.f32.mrb[0].mxu1 }
 0x1d4   :  { %v214_v57 = vadd.f32 %v329_v55, %v213_v56  ;;  %v406_v58 = vpop.f32.mrb[1].mxu1 }
 0x1d6   :  { %v217_v59 = vmax.f32 %v214_v57, 0.0 }
 0x1d8   :  { %440 = vmatmul.mubr.f32.vlgmr.msra.gmra.mrb[2].mxu0 %v217_v59 }
 0x2ab   :  { %v305_v61 = vpop.f32.mrb[2].mxu0 }
 0x2ac   :  { %v306_v62 = vadd.f32 %v330_v60, %v305_v61  ;;  %v441_v63 = vpop.f32.mrb[3].mxu0 }
 0x2ae   :  { %309 = vst.msk [vmem:[#allocation7] sm:$0xff] %vm51_vm1, %v306_v62 }
 0x2af   :  { %314 = vsyncadd [#allocation4], 96  ;;  %s579_s23 = smov [#allocation7]  }
 0x2b0   :  { %s315_s24 = sshll.u32 %s579_s23, 4  ;;  %s316_s24 = int_to_ptr.vmem [resolvable:$true] %s315_s24 }
 0x2b1   :  { %s544_s25 = scalar_lea.vmem %s316_s24, 32  ;;  %s548_s26 = scalar_lea.vmem %s316_s24, 128 }
 0x2b2   :  { %p545_p2 = scmp.ne.s32.totalorder %s316_s24, %s544_s25  ;;  %p549_p3 = scmp.lt.s32.totalorder %s316_s24, %s316_s24 }
 0x2b3   :  { %p550_p4 = scmp.lt.s32.totalorder %s548_s26, %s544_s25 }
 0x2b5   :  { %p551_p5 = por %p550_p4, %p549_p3 }
 0x2b7   :  { %p552_p6 = pnand %p551_p5, %p545_p2 }
 0x2b9   :  { %555 = shalt.err (!%p552_p6)
}
 0x2ba   :  { %s556_s4 = scalar_lea.hbm %s686_s5, 32 }
 0x2bb   :  { %p557_p7 = scmp.ne.s32.totalorder %s686_s5, %s556_s4  ;;  %p560_p8 = scmp.lt.u32.totalorder %s556_s4, %s686_s5 }
 0x2bd   :  { %p562_p9 = pnand %p560_p8, %p557_p7 }
 0x2bf   :  { %565 = shalt.err (!%p562_p9)
}
 0x2c0   :  { %s580_s8 = smov 32   ;;  %s581_s9 = smov 2  }
 0x2c1   :  { %321 = dma.vmem_to_hbm [thread:$0]  %s316_s24, 32, %s686_s5, [#allocation4], %s580_s8, %s580_s8, %s581_s9  }
 0x2c2   :  { %570 = dma.done.wait [#allocation4], 128  }
 0x2c3   :  { %571 = vsyncadd [#allocation4], 4294967168 }
 0x2c4   :  { %325 = vsyncpa [#allocation3], 1 }
 0x2c5   :  { %326 = vsyncpa [#allocation6], 1 }
 0x2c6   :  { %327 = vsyncpa [#allocation4], 1 }

</bundles_post_ra>
